<compile_context>
chip_gen: v7x
topology: tpu7x:2x2x1
jax: 0.10.0
libtpu: 0.0.40
codegen_flags: <defaults>
</compile_context>

<pallas_src>
import math

import jax
import jax.numpy as jnp
from jax.experimental import pallas as pl
from jax.experimental.pallas import tpu as pltpu

_SUBLANE = 8


def _round_up(x, m):
    return ((x + m - 1) // m) * m


def _fc_mlp_kernel(x_ref, *refs):
    """refs = (w0, b0, w1, b1, ..., w_{L-1}, b_{L-1}, out_ref).

    x_ref and weights are in the compute dtype (bf16 by default, MXU
    operands); biases are f32.  Accumulation, bias add and ReLU run in f32.
    """
    out_ref = refs[-1]
    wb = refs[:-1]
    n_layers = len(wb) // 2

    h = x_ref[...]                                   # (TB, in_features)
    for i in range(n_layers):
        w = wb[2 * i][...]                           # (d_in, d_out) compute dtype
        b = wb[2 * i + 1][...]                       # (1,   d_out) f32
        acc = jnp.dot(h, w, preferred_element_type=jnp.float32) + b
        if i < n_layers - 1:
            # ReLU on every layer except the last (last_activation=None).
            h = jnp.maximum(acc, 0.0).astype(w.dtype)
        else:
            out_ref[...] = acc.astype(out_ref.dtype)


def prepare_fc_params(params, compute_dtype=jnp.bfloat16):
    """One-time weight prep (hoisted out of the per-frame forward):
    cast weights to the MXU compute dtype, keep biases in f32 as (1, d_out)."""
    prepared = []
    for (w, b) in params:
        w_c = jnp.asarray(w, compute_dtype)
        b_c = jnp.asarray(b, jnp.float32).reshape(1, -1)
        prepared.append((w_c, b_c))
    return prepared


def fc_forward(x, prepared_params, *, block_batch=1024,
               single_buffer_weights=True):
    """x: (batch, in_features); prepared_params: output of prepare_fc_params.

    block_batch: batch tile size; large tiles (1024-2048) amortize the
    ~0.35 us per-grid-step overhead for real neural-deferred-shading pixel
    counts.  For v7x, prefer configurations where batch/block_batch >= 4 so
    both TensorCores stay busy.
    """
    batch, in_features = x.shape
    out_features = prepared_params[-1][0].shape[1]
    compute_dtype = prepared_params[0][0].dtype
    out_dtype = x.dtype

    # ---- batch tiling (sublane-aligned, padded so the grid divides evenly) --
    tb = min(block_batch, _round_up(batch, _SUBLANE))
    tb = _round_up(tb, _SUBLANE)
    batch_p = _round_up(batch, tb)

    x_c = x.astype(compute_dtype)
    if batch_p != batch:
        x_p = jnp.zeros((batch_p, in_features), compute_dtype).at[:batch].set(x_c)
    else:
        x_p = x_c

    # ---- VMEM budget: footprint-derived rather than a blanket constant ------
    weight_bytes = sum(w.size * w.dtype.itemsize + b.size * 4
                       for w, b in prepared_params)
    act_width = max(in_features, out_features,
                    *(w.shape[1] for w, _ in prepared_params))
    vmem_need = (2 * tb * in_features * x_p.dtype.itemsize   # x double buffer
                 + 2 * tb * out_features * 4                 # out double buffer
                 + 2 * weight_bytes                          # resident weights
                 + 6 * tb * act_width * 4)                   # activation temps
    # 32 MiB floor is safe on every generation; only very large resident-weight
    # configs push higher (those only make sense on v5e/v6e's 128 MiB VMEM).
    vmem_limit = int(min(max(2 * vmem_need, 32 * 1024 * 1024), 100 * 1024 * 1024))

    flops = 2 * batch_p * sum(w.shape[0] * w.shape[1] for w, _ in prepared_params)
    bytes_accessed = (x_p.size * x_p.dtype.itemsize
                      + batch_p * out_features * jnp.dtype(out_dtype).itemsize
                      + weight_bytes)

    def _const_spec(shape, pipeline_mode):
        if pipeline_mode is None:
            return pl.BlockSpec(shape, lambda i: (0, 0))
        return pl.BlockSpec(shape, lambda i: (0, 0), pipeline_mode=pipeline_mode)

    def _call(weight_pipeline_mode):
        flat = []
        # x streams per batch tile at its true (narrow) width: full-extent
        # last dim < 128 is legal and avoids 128-lane padding traffic.
        in_specs = [pl.BlockSpec((tb, in_features), lambda i: (i, 0))]
        for (w, b) in prepared_params:
            flat.extend((w, b))
            in_specs.append(_const_spec(w.shape, weight_pipeline_mode))
            in_specs.append(_const_spec(b.shape, weight_pipeline_mode))
        return pl.pallas_call(
            _fc_mlp_kernel,
            out_shape=jax.ShapeDtypeStruct((batch_p, out_features), out_dtype),
            grid=(batch_p // tb,),
            in_specs=in_specs,
            out_specs=pl.BlockSpec((tb, out_features), lambda i: (i, 0)),
            compiler_params=pltpu.CompilerParams(
                dimension_semantics=("parallel",),   # shard batch across TCs (v7x)
                vmem_limit_bytes=vmem_limit,
            ),
            cost_estimate=pl.CostEstimate(
                flops=flops, transcendentals=0, bytes_accessed=bytes_accessed),
        )(x_p, *flat)

    if single_buffer_weights:
        try:
            # Constant-index weight/bias specs: single-buffering halves their
            # VMEM residency (important on v7x for large hidden widths).
            out = _call(pl.Buffered(1))
        except Exception:
            # Fall back to the compiler-default (double-buffered) pipelining
            # if this JAX/Mosaic build rejects buffer_count=1.
            out = _call(None)
    else:
        out = _call(None)

    # Only batch padding (if any) needs to be sliced away; lanes are exact.
    return out[:batch] if batch_p != batch else out


def init_fc_params(key, in_features, out_features, hidden_features):
    """Deterministic init mirroring init_weights_normal:
    kaiming_normal_(fan_in, relu) -> std = sqrt(2 / fan_in); bias = 0."""
    dims = [(in_features, hidden_features[0])]
    for n in hidden_features:
        dims.append((n, n))
    dims.append((hidden_features[-1], out_features))

    params = []
    for (d_in, d_out) in dims:
        key, wk = jax.random.split(key)
        std = math.sqrt(2.0 / d_in)
        w = jax.random.normal(wk, (d_in, d_out), dtype=jnp.float32) * std
        b = jnp.zeros((1, d_out), dtype=jnp.float32)
        params.append((w, b))
    return params


def fc_reference(x, params, compute_dtype=jnp.bfloat16):
    """Pure-JAX reference with the same compute-dtype operand / f32-accumulate
    math as the kernel (bf16 operands by default)."""
    h = x.astype(compute_dtype)
    n = len(params)
    for i, (w, b) in enumerate(params):
        h = jnp.dot(h, w.astype(compute_dtype),
                    preferred_element_type=jnp.float32) + b
        if i < n - 1:
            h = jnp.maximum(h, 0.0).astype(compute_dtype)
    return h.astype(x.dtype)


if __name__ == "__main__":
    key = jax.random.PRNGKey(0)

    batch = 300                    # non-multiple: exercises batch padding
    in_features = 16
    hidden_features = [32, 32]
    out_features = 4

    pkey, xkey = jax.random.split(key)
    params = init_fc_params(pkey, in_features, out_features, hidden_features)
    x = jax.random.normal(xkey, (batch, in_features), dtype=jnp.float32)

    # One-time parameter preparation (hoisted out of the per-frame forward).
    prepared = prepare_fc_params(params)

    # Small tile here only so the multi-step pipelined grid path is exercised
    # at test scale; production default is block_batch=1024.
    y = fc_forward(x, prepared, block_batch=128)
    y = jax.block_until_ready(y)

    y_ref = fc_reference(x, params)
    assert y.shape == (batch, out_features)
    assert jnp.allclose(y, y_ref, atol=1e-3, rtol=1e-3), \
        float(jnp.max(jnp.abs(y - y_ref)))

    print("KERNEL_OK")
</pallas_src>

<mosaic_0001>
module attributes {stable_mosaic.version = 11 : i64} {
  func.func @_fc_mlp_kernel(%arg0: i32, %arg1: memref<128x16xbf16, #tpu.memory_space<vmem>>, %arg2: memref<16x32xbf16, #tpu.memory_space<vmem>>, %arg3: memref<1x32xf32, #tpu.memory_space<vmem>>, %arg4: memref<32x32xbf16, #tpu.memory_space<vmem>>, %arg5: memref<1x32xf32, #tpu.memory_space<vmem>>, %arg6: memref<32x32xbf16, #tpu.memory_space<vmem>>, %arg7: memref<1x32xf32, #tpu.memory_space<vmem>>, %arg8: memref<32x4xbf16, #tpu.memory_space<vmem>>, %arg9: memref<1x4xf32, #tpu.memory_space<vmem>>, %arg10: memref<128x4xf32, #tpu.memory_space<vmem>>) attributes {dimension_semantics = [#tpu.dimension_semantics<parallel>], iteration_bounds = array<i64: 3>, scalar_prefetch = 0 : i64, scratch_operands = 0 : i64, tpu.core_type = #tpu.core_type<tc>, window_params = [{transform_indices = @transform_0, window_bounds = array<i64: 128, 16>}, {pipeline_mode = #tpu.pipeline_mode<synchronous>, transform_indices = @transform_1, window_bounds = array<i64: 16, 32>}, {pipeline_mode = #tpu.pipeline_mode<synchronous>, transform_indices = @transform_2, window_bounds = array<i64: 1, 32>}, {pipeline_mode = #tpu.pipeline_mode<synchronous>, transform_indices = @transform_3, window_bounds = array<i64: 32, 32>}, {pipeline_mode = #tpu.pipeline_mode<synchronous>, transform_indices = @transform_4, window_bounds = array<i64: 1, 32>}, {pipeline_mode = #tpu.pipeline_mode<synchronous>, transform_indices = @transform_5, window_bounds = array<i64: 32, 32>}, {pipeline_mode = #tpu.pipeline_mode<synchronous>, transform_indices = @transform_6, window_bounds = array<i64: 1, 32>}, {pipeline_mode = #tpu.pipeline_mode<synchronous>, transform_indices = @transform_7, window_bounds = array<i64: 32, 4>}, {pipeline_mode = #tpu.pipeline_mode<synchronous>, transform_indices = @transform_8, window_bounds = array<i64: 1, 4>}, {transform_indices = @transform_9, window_bounds = array<i64: 128, 4>}]} {
    %c0 = arith.constant 0 : index
    %c0_0 = arith.constant 0 : index
    %0 = vector.load %arg1[%c0, %c0_0] : memref<128x16xbf16, #tpu.memory_space<vmem>>, vector<128x16xbf16>
    %c0_1 = arith.constant 0 : index
    %c0_2 = arith.constant 0 : index
    %1 = vector.load %arg2[%c0_1, %c0_2] : memref<16x32xbf16, #tpu.memory_space<vmem>>, vector<16x32xbf16>
    %c0_3 = arith.constant 0 : index
    %c0_4 = arith.constant 0 : index
    %2 = vector.load %arg3[%c0_3, %c0_4] : memref<1x32xf32, #tpu.memory_space<vmem>>, vector<1x32xf32>
    %cst = arith.constant dense<0.000000e+00> : vector<128x32xf32>
    %3 = tpu.matmul %0, %1, %cst {dimension_numbers = #tpu.dot_dimension_numbers<[1], [0], [0], [1], [0, 0, 1, 1], [], []>} : vector<128x16xbf16>, vector<16x32xbf16>, vector<128x32xf32> -> vector<128x32xf32>
    %4 = vector.broadcast %2 : vector<1x32xf32> to vector<128x32xf32>
    %5 = arith.addf %3, %4 : vector<128x32xf32>
    %cst_5 = arith.constant 0.000000e+00 : f32
    %6 = vector.broadcast %cst_5 : f32 to vector<128x32xf32>
    %7 = arith.maximumf %5, %6 : vector<128x32xf32>
    %8 = arith.truncf %7 : vector<128x32xf32> to vector<128x32xbf16>
    %c0_6 = arith.constant 0 : index
    %c0_7 = arith.constant 0 : index
    %9 = vector.load %arg4[%c0_6, %c0_7] : memref<32x32xbf16, #tpu.memory_space<vmem>>, vector<32x32xbf16>
    %c0_8 = arith.constant 0 : index
    %c0_9 = arith.constant 0 : index
    %10 = vector.load %arg5[%c0_8, %c0_9] : memref<1x32xf32, #tpu.memory_space<vmem>>, vector<1x32xf32>
    %cst_10 = arith.constant dense<0.000000e+00> : vector<128x32xf32>
    %11 = tpu.matmul %8, %9, %cst_10 {dimension_numbers = #tpu.dot_dimension_numbers<[1], [0], [0], [1], [0, 0, 1, 1], [], []>} : vector<128x32xbf16>, vector<32x32xbf16>, vector<128x32xf32> -> vector<128x32xf32>
    %12 = vector.broadcast %10 : vector<1x32xf32> to vector<128x32xf32>
    %13 = arith.addf %11, %12 : vector<128x32xf32>
    %cst_11 = arith.constant 0.000000e+00 : f32
    %14 = vector.broadcast %cst_11 : f32 to vector<128x32xf32>
    %15 = arith.maximumf %13, %14 : vector<128x32xf32>
    %16 = arith.truncf %15 : vector<128x32xf32> to vector<128x32xbf16>
    %c0_12 = arith.constant 0 : index
    %c0_13 = arith.constant 0 : index
    %17 = vector.load %arg6[%c0_12, %c0_13] : memref<32x32xbf16, #tpu.memory_space<vmem>>, vector<32x32xbf16>
    %c0_14 = arith.constant 0 : index
    %c0_15 = arith.constant 0 : index
    %18 = vector.load %arg7[%c0_14, %c0_15] : memref<1x32xf32, #tpu.memory_space<vmem>>, vector<1x32xf32>
    %cst_16 = arith.constant dense<0.000000e+00> : vector<128x32xf32>
    %19 = tpu.matmul %16, %17, %cst_16 {dimension_numbers = #tpu.dot_dimension_numbers<[1], [0], [0], [1], [0, 0, 1, 1], [], []>} : vector<128x32xbf16>, vector<32x32xbf16>, vector<128x32xf32> -> vector<128x32xf32>
    %20 = vector.broadcast %18 : vector<1x32xf32> to vector<128x32xf32>
    %21 = arith.addf %19, %20 : vector<128x32xf32>
    %cst_17 = arith.constant 0.000000e+00 : f32
    %22 = vector.broadcast %cst_17 : f32 to vector<128x32xf32>
    %23 = arith.maximumf %21, %22 : vector<128x32xf32>
    %24 = arith.truncf %23 : vector<128x32xf32> to vector<128x32xbf16>
    %c0_18 = arith.constant 0 : index
    %c0_19 = arith.constant 0 : index
    %25 = vector.load %arg8[%c0_18, %c0_19] : memref<32x4xbf16, #tpu.memory_space<vmem>>, vector<32x4xbf16>
    %c0_20 = arith.constant 0 : index
    %c0_21 = arith.constant 0 : index
    %26 = vector.load %arg9[%c0_20, %c0_21] : memref<1x4xf32, #tpu.memory_space<vmem>>, vector<1x4xf32>
    %cst_22 = arith.constant dense<0.000000e+00> : vector<128x4xf32>
    %27 = tpu.matmul %24, %25, %cst_22 {dimension_numbers = #tpu.dot_dimension_numbers<[1], [0], [0], [1], [0, 0, 1, 1], [], []>} : vector<128x32xbf16>, vector<32x4xbf16>, vector<128x4xf32> -> vector<128x4xf32>
    %28 = vector.broadcast %26 : vector<1x4xf32> to vector<128x4xf32>
    %29 = arith.addf %27, %28 : vector<128x4xf32>
    %c0_23 = arith.constant 0 : index
    %c0_24 = arith.constant 0 : index
    %30 = vector.load %arg10[%c0_23, %c0_24] : memref<128x4xf32, #tpu.memory_space<vmem>>, vector<128x4xf32>
    tpu.vector_store %arg10[%c0_23, %c0_24], %29 {strides = array<i32>} : memref<128x4xf32, #tpu.memory_space<vmem>>, vector<128x4xf32>,
    return
  }
  func.func @transform_0(%arg0: i32) -> (i32, i32) {
    %c0_i32 = arith.constant 0 : i32
    %c0_i32_0 = arith.constant 0 : i32
    return %arg0, %c0_i32 : i32, i32
  }
  func.func @transform_1(%arg0: i32) -> (i32, i32) {
    %c0_i32 = arith.constant 0 : i32
    %c0_i32_0 = arith.constant 0 : i32
    %c0_i32_1 = arith.constant 0 : i32
    return %c0_i32, %c0_i32_0 : i32, i32
  }
  func.func @transform_2(%arg0: i32) -> (i32, i32) {
    %c0_i32 = arith.constant 0 : i32
    %c0_i32_0 = arith.constant 0 : i32
    %c0_i32_1 = arith.constant 0 : i32
    return %c0_i32, %c0_i32_0 : i32, i32
  }
  func.func @transform_3(%arg0: i32) -> (i32, i32) {
    %c0_i32 = arith.constant 0 : i32
    %c0_i32_0 = arith.constant 0 : i32
    %c0_i32_1 = arith.constant 0 : i32
    return %c0_i32, %c0_i32_0 : i32, i32
  }
  func.func @transform_4(%arg0: i32) -> (i32, i32) {
    %c0_i32 = arith.constant 0 : i32
    %c0_i32_0 = arith.constant 0 : i32
    %c0_i32_1 = arith.constant 0 : i32
    return %c0_i32, %c0_i32_0 : i32, i32
  }
  func.func @transform_5(%arg0: i32) -> (i32, i32) {
    %c0_i32 = arith.constant 0 : i32
    %c0_i32_0 = arith.constant 0 : i32
    %c0_i32_1 = arith.constant 0 : i32
    return %c0_i32, %c0_i32_0 : i32, i32
  }
  func.func @transform_6(%arg0: i32) -> (i32, i32) {
    %c0_i32 = arith.constant 0 : i32
    %c0_i32_0 = arith.constant 0 : i32
    %c0_i32_1 = arith.constant 0 : i32
    return %c0_i32, %c0_i32_0 : i32, i32
  }
  func.func @transform_7(%arg0: i32) -> (i32, i32) {
    %c0_i32 = arith.constant 0 : i32
    %c0_i32_0 = arith.constant 0 : i32
    %c0_i32_1 = arith.constant 0 : i32
    return %c0_i32, %c0_i32_0 : i32, i32
  }
  func.func @transform_8(%arg0: i32) -> (i32, i32) {
    %c0_i32 = arith.constant 0 : i32
    %c0_i32_0 = arith.constant 0 : i32
    %c0_i32_1 = arith.constant 0 : i32
    return %c0_i32, %c0_i32_0 : i32, i32
  }
  func.func @transform_9(%arg0: i32) -> (i32, i32) {
    %c0_i32 = arith.constant 0 : i32
    %c0_i32_0 = arith.constant 0 : i32
    return %arg0, %c0_i32 : i32, i32
  }
}

module attributes {stable_mosaic.version = 11 : i64} {
  func.func @_fc_mlp_kernel(%arg0: i32, %arg1: memref<128x16xbf16, #tpu.memory_space<vmem>>, %arg2: memref<16x32xbf16, #tpu.memory_space<vmem>>, %arg3: memref<1x32xf32, #tpu.memory_space<vmem>>, %arg4: memref<32x32xbf16, #tpu.memory_space<vmem>>, %arg5: memref<1x32xf32, #tpu.memory_space<vmem>>, %arg6: memref<32x32xbf16, #tpu.memory_space<vmem>>, %arg7: memref<1x32xf32, #tpu.memory_space<vmem>>, %arg8: memref<32x4xbf16, #tpu.memory_space<vmem>>, %arg9: memref<1x4xf32, #tpu.memory_space<vmem>>, %arg10: memref<128x4xf32, #tpu.memory_space<vmem>>) attributes {dimension_semantics = [#tpu.dimension_semantics<parallel>], iteration_bounds = array<i64: 3>, scalar_prefetch = 0 : i64, scratch_operands = 0 : i64, tpu.core_type = #tpu.core_type<tc>, window_params = [{transform_indices = @transform_0, window_bounds = array<i64: 128, 16>}, {pipeline_mode = #tpu.pipeline_mode<synchronous>, transform_indices = @transform_1, window_bounds = array<i64: 16, 32>}, {pipeline_mode = #tpu.pipeline_mode<synchronous>, transform_indices = @transform_2, window_bounds = array<i64: 1, 32>}, {pipeline_mode = #tpu.pipeline_mode<synchronous>, transform_indices = @transform_3, window_bounds = array<i64: 32, 32>}, {pipeline_mode = #tpu.pipeline_mode<synchronous>, transform_indices = @transform_4, window_bounds = array<i64: 1, 32>}, {pipeline_mode = #tpu.pipeline_mode<synchronous>, transform_indices = @transform_5, window_bounds = array<i64: 32, 32>}, {pipeline_mode = #tpu.pipeline_mode<synchronous>, transform_indices = @transform_6, window_bounds = array<i64: 1, 32>}, {pipeline_mode = #tpu.pipeline_mode<synchronous>, transform_indices = @transform_7, window_bounds = array<i64: 32, 4>}, {pipeline_mode = #tpu.pipeline_mode<synchronous>, transform_indices = @transform_8, window_bounds = array<i64: 1, 4>}, {transform_indices = @transform_9, window_bounds = array<i64: 128, 4>}]} {
    %c0 = arith.constant 0 : index
    %c0_0 = arith.constant 0 : index
    %0 = vector.load %arg1[%c0, %c0_0] : memref<128x16xbf16, #tpu.memory_space<vmem>>, vector<128x16xbf16>
    %c0_1 = arith.constant 0 : index
    %c0_2 = arith.constant 0 : index
    %1 = vector.load %arg2[%c0_1, %c0_2] : memref<16x32xbf16, #tpu.memory_space<vmem>>, vector<16x32xbf16>
    %c0_3 = arith.constant 0 : index
    %c0_4 = arith.constant 0 : index
    %2 = vector.load %arg3[%c0_3, %c0_4] : memref<1x32xf32, #tpu.memory_space<vmem>>, vector<1x32xf32>
    %cst = arith.constant dense<0.000000e+00> : vector<128x32xf32>
    %3 = tpu.matmul %0, %1, %cst {dimension_numbers = #tpu.dot_dimension_numbers<[1], [0], [0], [1], [0, 0, 1, 1], [], []>} : vector<128x16xbf16>, vector<16x32xbf16>, vector<128x32xf32> -> vector<128x32xf32>
    %4 = vector.broadcast %2 : vector<1x32xf32> to vector<128x32xf32>
    %5 = arith.addf %3, %4 : vector<128x32xf32>
    %cst_5 = arith.constant 0.000000e+00 : f32
    %6 = vector.broadcast %cst_5 : f32 to vector<128x32xf32>
    %7 = arith.maximumf %5, %6 : vector<128x32xf32>
    %8 = arith.truncf %7 : vector<128x32xf32> to vector<128x32xbf16>
    %c0_6 = arith.constant 0 : index
    %c0_7 = arith.constant 0 : index
    %9 = vector.load %arg4[%c0_6, %c0_7] : memref<32x32xbf16, #tpu.memory_space<vmem>>, vector<32x32xbf16>
    %c0_8 = arith.constant 0 : index
    %c0_9 = arith.constant 0 : index
    %10 = vector.load %arg5[%c0_8, %c0_9] : memref<1x32xf32, #tpu.memory_space<vmem>>, vector<1x32xf32>
    %cst_10 = arith.constant dense<0.000000e+00> : vector<128x32xf32>
    %11 = tpu.matmul %8, %9, %cst_10 {dimension_numbers = #tpu.dot_dimension_numbers<[1], [0], [0], [1], [0, 0, 1, 1], [], []>} : vector<128x32xbf16>, vector<32x32xbf16>, vector<128x32xf32> -> vector<128x32xf32>
    %12 = vector.broadcast %10 : vector<1x32xf32> to vector<128x32xf32>
    %13 = arith.addf %11, %12 : vector<128x32xf32>
    %cst_11 = arith.constant 0.000000e+00 : f32
    %14 = vector.broadcast %cst_11 : f32 to vector<128x32xf32>
    %15 = arith.maximumf %13, %14 : vector<128x32xf32>
    %16 = arith.truncf %15 : vector<128x32xf32> to vector<128x32xbf16>
    %c0_12 = arith.constant 0 : index
    %c0_13 = arith.constant 0 : index
    %17 = vector.load %arg6[%c0_12, %c0_13] : memref<32x32xbf16, #tpu.memory_space<vmem>>, vector<32x32xbf16>
    %c0_14 = arith.constant 0 : index
    %c0_15 = arith.constant 0 : index
    %18 = vector.load %arg7[%c0_14, %c0_15] : memref<1x32xf32, #tpu.memory_space<vmem>>, vector<1x32xf32>
    %cst_16 = arith.constant dense<0.000000e+00> : vector<128x32xf32>
    %19 = tpu.matmul %16, %17, %cst_16 {dimension_numbers = #tpu.dot_dimension_numbers<[1], [0], [0], [1], [0, 0, 1, 1], [], []>} : vector<128x32xbf16>, vector<32x32xbf16>, vector<128x32xf32> -> vector<128x32xf32>
    %20 = vector.broadcast %18 : vector<1x32xf32> to vector<128x32xf32>
    %21 = arith.addf %19, %20 : vector<128x32xf32>
    %cst_17 = arith.constant 0.000000e+00 : f32
    %22 = vector.broadcast %cst_17 : f32 to vector<128x32xf32>
    %23 = arith.maximumf %21, %22 : vector<128x32xf32>
    %24 = arith.truncf %23 : vector<128x32xf32> to vector<128x32xbf16>
    %c0_18 = arith.constant 0 : index
    %c0_19 = arith.constant 0 : index
    %25 = vector.load %arg8[%c0_18, %c0_19] : memref<32x4xbf16, #tpu.memory_space<vmem>>, vector<32x4xbf16>
    %c0_20 = arith.constant 0 : index
    %c0_21 = arith.constant 0 : index
    %26 = vector.load %arg9[%c0_20, %c0_21] : memref<1x4xf32, #tpu.memory_space<vmem>>, vector<1x4xf32>
    %cst_22 = arith.constant dense<0.000000e+00> : vector<128x4xf32>
    %27 = tpu.matmul %24, %25, %cst_22 {dimension_numbers = #tpu.dot_dimension_numbers<[1], [0], [0], [1], [0, 0, 1, 1], [], []>} : vector<128x32xbf16>, vector<32x4xbf16>, vector<128x4xf32> -> vector<128x4xf32>
    %28 = vector.broadcast %26 : vector<1x4xf32> to vector<128x4xf32>
    %29 = arith.addf %27, %28 : vector<128x4xf32>
    %c0_23 = arith.constant 0 : index
    %c0_24 = arith.constant 0 : index
    %30 = vector.load %arg10[%c0_23, %c0_24] : memref<128x4xf32, #tpu.memory_space<vmem>>, vector<128x4xf32>
    tpu.vector_store %arg10[%c0_23, %c0_24], %29 {strides = array<i32>} : memref<128x4xf32, #tpu.memory_space<vmem>>, vector<128x4xf32>,
    return
  }
  func.func @transform_0(%arg0: i32) -> (i32, i32) {
    %c0_i32 = arith.constant 0 : i32
    %c0_i32_0 = arith.constant 0 : i32
    return %arg0, %c0_i32 : i32, i32
  }
  func.func @transform_1(%arg0: i32) -> (i32, i32) {
    %c0_i32 = arith.constant 0 : i32
    %c0_i32_0 = arith.constant 0 : i32
    %c0_i32_1 = arith.constant 0 : i32
    return %c0_i32, %c0_i32_0 : i32, i32
  }
  func.func @transform_2(%arg0: i32) -> (i32, i32) {
    %c0_i32 = arith.constant 0 : i32
    %c0_i32_0 = arith.constant 0 : i32
    %c0_i32_1 = arith.constant 0 : i32
    return %c0_i32, %c0_i32_0 : i32, i32
  }
  func.func @transform_3(%arg0: i32) -> (i32, i32) {
    %c0_i32 = arith.constant 0 : i32
    %c0_i32_0 = arith.constant 0 : i32
    %c0_i32_1 = arith.constant 0 : i32
    return %c0_i32, %c0_i32_0 : i32, i32
  }
  func.func @transform_4(%arg0: i32) -> (i32, i32) {
    %c0_i32 = arith.constant 0 : i32
    %c0_i32_0 = arith.constant 0 : i32
    %c0_i32_1 = arith.constant 0 : i32
    return %c0_i32, %c0_i32_0 : i32, i32
  }
  func.func @transform_5(%arg0: i32) -> (i32, i32) {
    %c0_i32 = arith.constant 0 : i32
    %c0_i32_0 = arith.constant 0 : i32
    %c0_i32_1 = arith.constant 0 : i32
    return %c0_i32, %c0_i32_0 : i32, i32
  }
  func.func @transform_6(%arg0: i32) -> (i32, i32) {
    %c0_i32 = arith.constant 0 : i32
    %c0_i32_0 = arith.constant 0 : i32
    %c0_i32_1 = arith.constant 0 : i32
    return %c0_i32, %c0_i32_0 : i32, i32
  }
  func.func @transform_7(%arg0: i32) -> (i32, i32) {
    %c0_i32 = arith.constant 0 : i32
    %c0_i32_0 = arith.constant 0 : i32
    %c0_i32_1 = arith.constant 0 : i32
    return %c0_i32, %c0_i32_0 : i32, i32
  }
  func.func @transform_8(%arg0: i32) -> (i32, i32) {
    %c0_i32 = arith.constant 0 : i32
    %c0_i32_0 = arith.constant 0 : i32
    %c0_i32_1 = arith.constant 0 : i32
    return %c0_i32, %c0_i32_0 : i32, i32
  }
  func.func @transform_9(%arg0: i32) -> (i32, i32) {
    %c0_i32 = arith.constant 0 : i32
    %c0_i32_0 = arith.constant 0 : i32
    return %arg0, %c0_i32 : i32, i32
  }
}

</mosaic_0001>

<bundles_post_ra>
// kernel: tpu_custom_call.1
= control target key start
LH: loop header
LB: loop body
LE: loop exit
PB: predicated region body
PF: predicated region fallthrough
CT: control target
= control target key end

     0   :  { %s1368_s30 = smov 0   ;;  %s1488_s0 = inlined_call_operand.vmem [shape: bf16[384,16], index: 0, kind: input, shape index: {}]   ;;  %s1489_s1 = inlined_call_operand.vmem [shape: bf16[16,32], index: 1, kind: input, shape index: {}]   ;;  %s1490_s2 = inlined_call_operand.vmem [shape: f32[1,32], index: 2, kind: input, shape index: {}]   ;;  %s1491_s3 = inlined_call_operand.vmem [shape: bf16[32,32], index: 3, kind: input, shape index: {}]   ;;  %s1492_s4 = inlined_call_operand.vmem [shape: f32[1,32], index: 4, kind: input, shape index: {}]   ;;  %s1493_s5 = inlined_call_operand.vmem [shape: bf16[32,32], index: 5, kind: input, shape index: {}]   ;;  %s1494_s6 = inlined_call_operand.vmem [shape: f32[1,32], index: 6, kind: input, shape index: {}]   ;;  %s1495_s7 = inlined_call_operand.vmem [shape: bf16[32,4], index: 7, kind: input, shape index: {}]   ;;  %s1496_s8 = inlined_call_operand.vmem [shape: f32[1,4], index: 8, kind: input, shape index: {}]   ;;  %s1497_s9 = inlined_call_operand.vmem [shape: f32[384,4], index: 9, kind: output, shape index: {}]  }
   0x1 LB: > { %s1108_s10 = sadd.s32 4294967295, %s1316_s30   ;;  %p1112_p0 = scmp.ge.s32.totalorder %s1316_s30, 1  ;;  %s1316_s30 = sphi %s1368_s30, %s19_s30  }
   0x2   : > { %p288_p1 = scmp.lt.s32.totalorder %s1316_s30, 4 }
   0x4   : > { %p289_p2 = pnand %p1112_p0, %p288_p1 }
   0x5   : > { %v1295_v0 = vld [vmem:[%s1489_s1] sm:$0xff] (!%p289_p2)   ;;  %s1113_s13 = sshll.u32 (!%p289_p2), %s1108_s10, 4  ;;  %vm408_vm0 = vcmask (!%p289_p2), 130048   ;;  %v1305_v10 = vld [vmem:[%s1491_s3 + $0x8] sm:$0xff] (!%p289_p2)   ;;  %vm577_vm1 = vcmask (!%p289_p2), 261120   ;;  %vm1035_vm2 = vcmask (!%p289_p2), 31744  }
   0x6   : > { %292 = sbr.rel (%p289_p2) target bundleno = 926 (0x39e), region = 56  ;;  %p325_p3 = scmp.lt.s32.totalorder (!%p289_p2), %s1113_s13, 47  ;;  %1209 = vmatprep.subr.bf16.mxu0 (!%p289_p2), %v1295_v0  ;;  %v1304_v9 = vld [vmem:[%s1491_s3] sm:$0xff] (!%p289_p2)   ;;  %v1307_v12 = vld [vmem:[%s1493_s5 + $0x8] sm:$0xff] (!%p289_p2)  }
   0x7   : > { %1210 = vmatpush3.bf16.msra.mxu0 (!%p289_p2), %v1295_v0  ;;  %1227 = vmatprep.subr.bf16.mxu1 (!%p289_p2), %v1304_v9  ;;  %v1306_v11 = vld [vmem:[%s1493_s5] sm:$0xff] (!%p289_p2)  }
   0x8   : > { %1228 = vmatpush3.bf16.msra.mxu1 (!%p289_p2), %v1304_v9  ;;  %1247 = vmatprep.subr.bf16.mxu0 (!%p289_p2), %v1306_v11  ;;  %v1117_v13 = vld [vmem:[%s1490_s2] ss:$0 sm:$0xff] (!%p289_p2) }
   0x9   : > { %1229 = vmatprep.subr.bf16.mxu1 (!%p289_p2), %v1305_v10 }
   0xc   : > { %1230 = vmatpush3.bf16.msra.mxu1 (!%p289_p2), %v1305_v10 }
   0xd   : > { %s1499_s13 = smov (!%p325_p3, %s1113_s13), 47 }
   0xe   : > { %s1114_s14 = sshll.u32 %s1499_s13, 2 }
   0xf   : > { %s328_s17 = scalar_lea.vmem %s1488_s0, %s1114_s14 }
  0x10   : > { %v1296_v1 = vld [vmem:[%s328_s17] sm:$0xff]   ;;  %v1297_v2 = vld [vmem:[%s328_s17 + $0x8] sm:$0xff]   ;;  %v1298_v3 = vld [vmem:[%s328_s17 + $0x10] sm:$0xff]  }
  0x11   : > { %1211 = vmatprep.mubr.msk.bf16.mxu0 %vm408_vm0, %v1296_v1  ;;  %v1299_v4 = vld [vmem:[%s328_s17 + $0x18] sm:$0xff]   ;;  %v1300_v5 = vld [vmem:[%s328_s17 + $0x20] sm:$0xff]   ;;  %v1301_v6 = vld [vmem:[%s328_s17 + $0x28] sm:$0xff]  }
  0x12   : > { %1212 = vmatmul.mubr.msk.bf16.vlgmr.msra.gmra.mrb[0].mxu0 %vm408_vm0, %v1297_v2  ;;  %v1302_v7 = vld [vmem:[%s328_s17 + $0x30] sm:$0xff]   ;;  %v1303_v8 = vld [vmem:[%s328_s17 + $0x38] sm:$0xff]   ;;  %s1116_s17 = sshll.u32 %s1499_s13, 3 }
  0x13   : > { %1215 = vmatprep.mubr.msk.bf16.mxu0 %vm408_vm0, %v1298_v3  ;;  %1248 = vmatpush3.bf16.msra.mxu0 %v1306_v11  ;;  %s1451_s22 = scalar_lea.vmem %s1497_s9, %s1116_s17 }
  0x14   : > { %1249 = vmatprep.subr.bf16.mxu0 %v1307_v12 }
  0x17   : > { %1250 = vmatpush3.bf16.msra.mxu0 %v1307_v12 }
  0x1a   : > { %1216 = vmatmul.mubr.msk.bf16.gmra.mrb[4].mxu0 %vm408_vm0, %v1299_v4 }
  0x1b   : > { %1219 = vmatprep.mubr.msk.bf16.mxu0 %vm408_vm0, %v1300_v5 }
  0x22   : > { %1220 = vmatmul.mubr.msk.bf16.gmra.mrb[8].mxu0 %vm408_vm0, %v1301_v6  ;;  %v1308_v6 = vld [vmem:[%s1495_s7] sm:$0xff]  }
  0x23   : > { %1223 = vmatprep.mubr.msk.bf16.mxu0 %vm408_vm0, %v1302_v7  ;;  %v1309_v7 = vld [vmem:[%s1495_s7 + $0x8] sm:$0xff]   ;;  %1267 = vmatprep.subr.bf16.mxu1 %v1308_v6 }
  0x2a   : > { %1224 = vmatmul.mubr.msk.bf16.gmra.mrb[12].mxu0 %vm408_vm0, %v1303_v8  ;;  %v1135_v8 = vld [vmem:[%s1492_s4] ss:$0 sm:$0xff] }
  0xe5   : > { %v1213_v14 = vpop.f32.mrb[0].mxu0 }
  0xe6   : > { %v476_v15 = vadd.f32 %v1213_v14, %v1117_v13  ;;  %v467_v16 = vpop.f32.mrb[1].mxu0 }
  0xe7   : > { %v468_v17 = vadd.f32 %v1117_v13, %v467_v16  ;;  %v1214_v18 = vpop.f32.mrb[2].mxu0 }
  0xe8   : > { %v479_v19 = vadd.f32 %v1214_v18, %v1117_v13  ;;  %v470_v20 = vpop.f32.mrb[3].mxu0  ;;  %v532_v22 = vmax.f32 %v476_v15, 0.0 }
  0xe9   : > { %v471_v21 = vadd.f32 %v1117_v13, %v470_v20  ;;  %v530_v24 = vmax.f32 %v468_v17, 0.0 }
  0xea   : > { %v533_v23 = vmax.f32 %v479_v19, 0.0 }
  0xeb   : > { %v531_v25 = vmax.f32 %v471_v21, 0.0 }
  0xec   : > { %v547_v26 = vpack.c.bf16 %v533_v23, %v532_v22 }
  0xed   : > { %v1217_v27 = vpop.f32.mrb[4].mxu0  ;;  %v546_v28 = vpack.c.bf16 %v531_v25, %v530_v24 }
  0xee   : > { %v492_v29 = vadd.f32 %v1217_v27, %v1117_v13  ;;  %v483_v30 = vpop.f32.mrb[5].mxu0 }
  0xef   : > { %v484_v31 = vadd.f32 %v1117_v13, %v483_v30  ;;  %v1218_v32 = vpop.f32.mrb[6].mxu0  ;;  %1231 = vmatprep.mubr.msk.bf16.mxu1 %vm577_vm1, %v546_v28 }
  0xf0   : > { %v495_v33 = vadd.f32 %v1218_v32, %v1117_v13  ;;  %v486_v34 = vpop.f32.mrb[7].mxu0  ;;  %1232 = vmatmul.mubr.msk.bf16.vlgmr.msra.gmra.mrb[0].mxu1 %vm577_vm1, %v547_v26  ;;  %v536_v36 = vmax.f32 %v492_v29, 0.0 }
  0xf1   : > { %v487_v35 = vadd.f32 %v1117_v13, %v486_v34  ;;  %v534_v38 = vmax.f32 %v484_v31, 0.0  ;;  %1268 = vmatpush3.bf16.msra.mxu1 %v1308_v6 }
  0xf2   : > { %v537_v37 = vmax.f32 %v495_v33, 0.0  ;;  %1269 = vmatprep.subr.bf16.mxu1 %v1309_v7 }
  0xf3   : > { %v535_v39 = vmax.f32 %v487_v35, 0.0 }
  0xf4   : > { %v549_v40 = vpack.c.bf16 %v537_v37, %v536_v36 }
  0xf5   : > { %v548_v41 = vpack.c.bf16 %v535_v39, %v534_v38  ;;  %v1221_v42 = vpop.f32.mrb[8].mxu0  ;;  %1270 = vmatpush3.bf16.msra.mxu1 %v1309_v7 }
  0xf6   : > { %v508_v43 = vadd.f32 %v1221_v42, %v1117_v13  ;;  %v499_v44 = vpop.f32.mrb[9].mxu0 }
  0xf7   : > { %v500_v45 = vadd.f32 %v1117_v13, %v499_v44  ;;  %v1222_v46 = vpop.f32.mrb[10].mxu0  ;;  %1235 = vmatprep.mubr.msk.bf16.mxu1 %vm577_vm1, %v548_v41 }
  0xf8   : > { %v511_v47 = vadd.f32 %v1222_v46, %v1117_v13  ;;  %v502_v48 = vpop.f32.mrb[11].mxu0  ;;  %1236 = vmatmul.mubr.msk.bf16.gmra.mrb[4].mxu1 %vm577_vm1, %v549_v40  ;;  %v540_v50 = vmax.f32 %v508_v43, 0.0 }
  0xf9   : > { %v503_v49 = vadd.f32 %v1117_v13, %v502_v48  ;;  %v538_v52 = vmax.f32 %v500_v45, 0.0 }
  0xfa   : > { %v541_v51 = vmax.f32 %v511_v47, 0.0 }
  0xfb   : > { %v539_v53 = vmax.f32 %v503_v49, 0.0 }
  0xfc   : > { %v551_v54 = vpack.c.bf16 %v541_v51, %v540_v50 }
  0xfd   : > { %v550_v55 = vpack.c.bf16 %v539_v53, %v538_v52  ;;  %v1225_v56 = vpop.f32.mrb[12].mxu0 }
  0xfe   : > { %v524_v57 = vadd.f32 %v1225_v56, %v1117_v13  ;;  %v515_v58 = vpop.f32.mrb[13].mxu0 }
  0xff   : > { %v516_v59 = vadd.f32 %v1117_v13, %v515_v58  ;;  %v1226_v60 = vpop.f32.mrb[14].mxu0  ;;  %1239 = vmatprep.mubr.msk.bf16.mxu1 %vm577_vm1, %v550_v55 }
 0x100   : > { %v527_v61 = vadd.f32 %v1226_v60, %v1117_v13  ;;  %v518_v62 = vpop.f32.mrb[15].mxu0  ;;  %1240 = vmatmul.mubr.msk.bf16.gmra.mrb[8].mxu1 %vm577_vm1, %v551_v54  ;;  %v544_v0 = vmax.f32 %v524_v57, 0.0 }
 0x101   : > { %v519_v63 = vadd.f32 %v1117_v13, %v518_v62  ;;  %v542_v2 = vmax.f32 %v516_v59, 0.0 }
 0x102   : > { %v545_v1 = vmax.f32 %v527_v61, 0.0 }
 0x103   : > { %v543_v3 = vmax.f32 %v519_v63, 0.0 }
 0x104   : > { %v553_v4 = vpack.c.bf16 %v545_v1, %v544_v0  ;;  %v1146_v1 = vld [vmem:[%s1494_s6] ss:$0 sm:$0xff] }
 0x105   : > { %v552_v5 = vpack.c.bf16 %v543_v3, %v542_v2 }
 0x107   : > { %1243 = vmatprep.mubr.msk.bf16.mxu1 %vm577_vm1, %v552_v5 }
 0x108   : > { %1244 = vmatmul.mubr.msk.bf16.gmra.mrb[12].mxu1 %vm577_vm1, %v553_v4 }
 0x1c3   : > { %v1233_v9 = vpop.f32.mrb[0].mxu1 }
 0x1c4   : > { %v645_v10 = vadd.f32 %v1233_v9, %v1135_v8  ;;  %v636_v11 = vpop.f32.mrb[1].mxu1 }
 0x1c5   : > { %v637_v12 = vadd.f32 %v1135_v8, %v636_v11  ;;  %v1234_v13 = vpop.f32.mrb[2].mxu1 }
 0x1c6   : > { %v648_v14 = vadd.f32 %v1234_v13, %v1135_v8  ;;  %v639_v15 = vpop.f32.mrb[3].mxu1  ;;  %v701_v17 = vmax.f32 %v645_v10, 0.0 }
 0x1c7   : > { %v640_v16 = vadd.f32 %v1135_v8, %v639_v15  ;;  %v699_v19 = vmax.f32 %v637_v12, 0.0 }
 0x1c8   : > { %v702_v18 = vmax.f32 %v648_v14, 0.0 }
 0x1c9   : > { %v700_v20 = vmax.f32 %v640_v16, 0.0 }
 0x1ca   : > { %v716_v21 = vpack.c.bf16 %v702_v18, %v701_v17 }
 0x1cb   : > { %v715_v22 = vpack.c.bf16 %v700_v20, %v699_v19  ;;  %v1237_v23 = vpop.f32.mrb[4].mxu1 }
 0x1cc   : > { %v661_v24 = vadd.f32 %v1237_v23, %v1135_v8  ;;  %v652_v25 = vpop.f32.mrb[5].mxu1 }
 0x1cd   : > { %v653_v26 = vadd.f32 %v1135_v8, %v652_v25  ;;  %v1238_v27 = vpop.f32.mrb[6].mxu1  ;;  %1251 = vmatprep.mubr.msk.bf16.mxu0 %vm577_vm1, %v715_v22 }
 0x1ce   : > { %v664_v28 = vadd.f32 %v1238_v27, %v1135_v8  ;;  %v655_v29 = vpop.f32.mrb[7].mxu1  ;;  %1252 = vmatmul.mubr.msk.bf16.vlgmr.msra.gmra.mrb[16].mxu0 %vm577_vm1, %v716_v21  ;;  %v705_v31 = vmax.f32 %v661_v24, 0.0 }
 0x1cf   : > { %v656_v30 = vadd.f32 %v1135_v8, %v655_v29  ;;  %v703_v33 = vmax.f32 %v653_v26, 0.0 }
 0x1d0   : > { %v706_v32 = vmax.f32 %v664_v28, 0.0 }
 0x1d1   : > { %v704_v34 = vmax.f32 %v656_v30, 0.0 }
 0x1d2   : > { %v718_v35 = vpack.c.bf16 %v706_v32, %v705_v31 }
 0x1d3   : > { %v717_v36 = vpack.c.bf16 %v704_v34, %v703_v33  ;;  %v1241_v37 = vpop.f32.mrb[8].mxu1 }
 0x1d4   : > { %v677_v38 = vadd.f32 %v1241_v37, %v1135_v8  ;;  %v668_v39 = vpop.f32.mrb[9].mxu1 }
 0x1d5   : > { %v669_v40 = vadd.f32 %v1135_v8, %v668_v39  ;;  %v1242_v41 = vpop.f32.mrb[10].mxu1  ;;  %1255 = vmatprep.mubr.msk.bf16.mxu0 %vm577_vm1, %v717_v36 }
 0x1d6   : > { %v680_v42 = vadd.f32 %v1242_v41, %v1135_v8  ;;  %v671_v43 = vpop.f32.mrb[11].mxu1  ;;  %1256 = vmatmul.mubr.msk.bf16.gmra.mrb[20].mxu0 %vm577_vm1, %v718_v35  ;;  %v709_v45 = vmax.f32 %v677_v38, 0.0 }
 0x1d7   : > { %v672_v44 = vadd.f32 %v1135_v8, %v671_v43  ;;  %v707_v47 = vmax.f32 %v669_v40, 0.0 }
 0x1d8   : > { %v710_v46 = vmax.f32 %v680_v42, 0.0 }
 0x1d9   : > { %v708_v48 = vmax.f32 %v672_v44, 0.0 }
 0x1da   : > { %v720_v49 = vpack.c.bf16 %v710_v46, %v709_v45 }
 0x1db   : > { %v719_v50 = vpack.c.bf16 %v708_v48, %v707_v47  ;;  %v1245_v51 = vpop.f32.mrb[12].mxu1 }
 0x1dc   : > { %v693_v52 = vadd.f32 %v1245_v51, %v1135_v8  ;;  %v684_v53 = vpop.f32.mrb[13].mxu1 }
 0x1dd   : > { %v685_v54 = vadd.f32 %v1135_v8, %v684_v53  ;;  %v1246_v55 = vpop.f32.mrb[14].mxu1  ;;  %1259 = vmatprep.mubr.msk.bf16.mxu0 %vm577_vm1, %v719_v50 }
 0x1de   : > { %v696_v56 = vadd.f32 %v1246_v55, %v1135_v8  ;;  %v687_v57 = vpop.f32.mrb[15].mxu1  ;;  %1260 = vmatmul.mubr.msk.bf16.gmra.mrb[24].mxu0 %vm577_vm1, %v720_v49  ;;  %v713_v59 = vmax.f32 %v693_v52, 0.0 }
 0x1df   : > { %v688_v58 = vadd.f32 %v1135_v8, %v687_v57  ;;  %v711_v61 = vmax.f32 %v685_v54, 0.0 }
 0x1e0   : > { %v714_v60 = vmax.f32 %v696_v56, 0.0 }
 0x1e1   : > { %v712_v62 = vmax.f32 %v688_v58, 0.0  ;;  %v1157_v58 = vld [vmem:[%s1496_s8] ss:$0 sm:$0xff] }
 0x1e2   : > { %v722_v63 = vpack.c.bf16 %v714_v60, %v713_v59 }
 0x1e3   : > { %v721_v0 = vpack.c.bf16 %v712_v62, %v711_v61 }
 0x1e5   : > { %1263 = vmatprep.mubr.msk.bf16.mxu0 %vm577_vm1, %v721_v0 }
 0x1e6   : > { %1264 = vmatmul.mubr.msk.bf16.gmra.mrb[28].mxu0 %vm577_vm1, %v722_v63 }
 0x2a1   : > { %v1253_v2 = vpop.f32.mrb[16].mxu0 }
 0x2a2   : > { %v813_v3 = vadd.f32 %v1253_v2, %v1146_v1  ;;  %v804_v4 = vpop.f32.mrb[17].mxu0 }
 0x2a3   : > { %v805_v5 = vadd.f32 %v1146_v1, %v804_v4  ;;  %v1254_v6 = vpop.f32.mrb[18].mxu0 }
 0x2a4   : > { %v816_v7 = vadd.f32 %v1254_v6, %v1146_v1  ;;  %v807_v8 = vpop.f32.mrb[19].mxu0  ;;  %v869_v10 = vmax.f32 %v813_v3, 0.0 }
 0x2a5   : > { %v808_v9 = vadd.f32 %v1146_v1, %v807_v8  ;;  %v867_v12 = vmax.f32 %v805_v5, 0.0 }
 0x2a6   : > { %v870_v11 = vmax.f32 %v816_v7, 0.0 }
 0x2a7   : > { %v868_v13 = vmax.f32 %v808_v9, 0.0 }
 0x2a8   : > { %v884_v14 = vpack.c.bf16 %v870_v11, %v869_v10 }
 0x2a9   : > { %v883_v15 = vpack.c.bf16 %v868_v13, %v867_v12  ;;  %v1257_v16 = vpop.f32.mrb[20].mxu0 }
 0x2aa   : > { %v829_v17 = vadd.f32 %v1257_v16, %v1146_v1  ;;  %v820_v18 = vpop.f32.mrb[21].mxu0 }
 0x2ab   : > { %v821_v19 = vadd.f32 %v1146_v1, %v820_v18  ;;  %v1258_v20 = vpop.f32.mrb[22].mxu0  ;;  %1271 = vmatprep.mubr.msk.bf16.mxu1 %vm577_vm1, %v883_v15 }
 0x2ac   : > { %v832_v21 = vadd.f32 %v1258_v20, %v1146_v1  ;;  %v823_v22 = vpop.f32.mrb[23].mxu0  ;;  %1272 = vmatmul.mubr.msk.bf16.vlgmr.msra.gmra.mrb[16].mxu1 %vm577_vm1, %v884_v14  ;;  %v873_v24 = vmax.f32 %v829_v17, 0.0 }
 0x2ad   : > { %v824_v23 = vadd.f32 %v1146_v1, %v823_v22  ;;  %v871_v26 = vmax.f32 %v821_v19, 0.0 }
 0x2ae   : > { %v874_v25 = vmax.f32 %v832_v21, 0.0 }
 0x2af   : > { %v872_v27 = vmax.f32 %v824_v23, 0.0 }
 0x2b0   : > { %v886_v28 = vpack.c.bf16 %v874_v25, %v873_v24 }
 0x2b1   : > { %v885_v29 = vpack.c.bf16 %v872_v27, %v871_v26  ;;  %v1261_v30 = vpop.f32.mrb[24].mxu0 }
 0x2b2   : > { %v845_v31 = vadd.f32 %v1261_v30, %v1146_v1  ;;  %v836_v32 = vpop.f32.mrb[25].mxu0 }
 0x2b3   : > { %v837_v33 = vadd.f32 %v1146_v1, %v836_v32  ;;  %v1262_v34 = vpop.f32.mrb[26].mxu0  ;;  %1275 = vmatprep.mubr.msk.bf16.mxu1 %vm577_vm1, %v885_v29 }
 0x2b4   : > { %v848_v35 = vadd.f32 %v1262_v34, %v1146_v1  ;;  %v839_v36 = vpop.f32.mrb[27].mxu0  ;;  %1276 = vmatmul.mubr.msk.bf16.gmra.mrb[20].mxu1 %vm577_vm1, %v886_v28  ;;  %v877_v38 = vmax.f32 %v845_v31, 0.0 }
 0x2b5   : > { %v840_v37 = vadd.f32 %v1146_v1, %v839_v36  ;;  %v875_v40 = vmax.f32 %v837_v33, 0.0 }
 0x2b6   : > { %v878_v39 = vmax.f32 %v848_v35, 0.0 }
 0x2b7   : > { %v876_v41 = vmax.f32 %v840_v37, 0.0 }
 0x2b8   : > { %v888_v42 = vpack.c.bf16 %v878_v39, %v877_v38 }
 0x2b9   : > { %v887_v43 = vpack.c.bf16 %v876_v41, %v875_v40  ;;  %v1265_v44 = vpop.f32.mrb[28].mxu0 }
 0x2ba   : > { %v861_v45 = vadd.f32 %v1265_v44, %v1146_v1  ;;  %v852_v46 = vpop.f32.mrb[29].mxu0 }
 0x2bb   : > { %v853_v47 = vadd.f32 %v1146_v1, %v852_v46  ;;  %v1266_v48 = vpop.f32.mrb[30].mxu0  ;;  %1279 = vmatprep.mubr.msk.bf16.mxu1 %vm577_vm1, %v887_v43 }
 0x2bc   : > { %v864_v49 = vadd.f32 %v1266_v48, %v1146_v1  ;;  %v855_v50 = vpop.f32.mrb[31].mxu0  ;;  %1280 = vmatmul.mubr.msk.bf16.gmra.mrb[24].mxu1 %vm577_vm1, %v888_v42  ;;  %v881_v52 = vmax.f32 %v861_v45, 0.0 }
 0x2bd   : > { %v856_v51 = vadd.f32 %v1146_v1, %v855_v50  ;;  %v879_v54 = vmax.f32 %v853_v47, 0.0 }
 0x2be   : > { %v882_v53 = vmax.f32 %v864_v49, 0.0 }
 0x2bf   : > { %v880_v55 = vmax.f32 %v856_v51, 0.0 }
 0x2c0   : > { %v890_v56 = vpack.c.bf16 %v882_v53, %v881_v52 }
 0x2c1   : > { %v889_v57 = vpack.c.bf16 %v880_v55, %v879_v54 }
 0x2c3   : > { %1283 = vmatprep.mubr.msk.bf16.mxu1 %vm577_vm1, %v889_v57 }
 0x2c4   : > { %1284 = vmatmul.mubr.msk.bf16.gmra.mrb[28].mxu1 %vm577_vm1, %v890_v56 }
 0x37f   : > { %v1273_v59 = vpop.f32.mrb[16].mxu1 }
 0x380   : > { %v981_v60 = vadd.f32 %v1273_v59, %v1157_v58  ;;  %v972_v61 = vpop.f32.mrb[17].mxu1 }
 0x381   : > { %v973_v62 = vadd.f32 %v1157_v58, %v972_v61  ;;  %v1274_v63 = vpop.f32.mrb[18].mxu1 }
 0x382   : > { %1038 = vst.msk [vmem:[%s1451_s22 + $0x10] sm:$0xff] %vm1035_vm2, %v981_v60  ;;  %v984_v0 = vadd.f32 %v1274_v63, %v1157_v58  ;;  %v975_v1 = vpop.f32.mrb[19].mxu1 }
 0x383   : > { %1036 = vst.msk [vmem:[%s1451_s22] sm:$0xff] %vm1035_vm2, %v973_v62  ;;  %v976_v2 = vadd.f32 %v1157_v58, %v975_v1 }
 0x384   : > { %1039 = vst.msk [vmem:[%s1451_s22 + $0x18] sm:$0xff] %vm1035_vm2, %v984_v0 }
 0x385   : > { %1037 = vst.msk [vmem:[%s1451_s22 + $0x8] sm:$0xff] %vm1035_vm2, %v976_v2 }
 0x387   : > { %v1277_v3 = vpop.f32.mrb[20].mxu1 }
 0x388   : > { %v997_v4 = vadd.f32 %v1277_v3, %v1157_v58  ;;  %v988_v5 = vpop.f32.mrb[21].mxu1 }
 0x389   : > { %v989_v6 = vadd.f32 %v1157_v58, %v988_v5  ;;  %v1278_v7 = vpop.f32.mrb[22].mxu1 }
 0x38a   : > { %1042 = vst.msk [vmem:[%s1451_s22 + $0x30] sm:$0xff] %vm1035_vm2, %v997_v4  ;;  %v1000_v8 = vadd.f32 %v1278_v7, %v1157_v58  ;;  %v991_v9 = vpop.f32.mrb[23].mxu1 }
 0x38b   : > { %1040 = vst.msk [vmem:[%s1451_s22 + $0x20] sm:$0xff] %vm1035_vm2, %v989_v6  ;;  %v992_v10 = vadd.f32 %v1157_v58, %v991_v9 }
 0x38c   : > { %1043 = vst.msk [vmem:[%s1451_s22 + $0x38] sm:$0xff] %vm1035_vm2, %v1000_v8 }
 0x38d   : > { %1041 = vst.msk [vmem:[%s1451_s22 + $0x28] sm:$0xff] %vm1035_vm2, %v992_v10 }
 0x38f   : > { %v1281_v11 = vpop.f32.mrb[24].mxu1 }
 0x390   : > { %v1013_v12 = vadd.f32 %v1281_v11, %v1157_v58  ;;  %v1004_v13 = vpop.f32.mrb[25].mxu1 }
 0x391   : > { %v1005_v14 = vadd.f32 %v1157_v58, %v1004_v13  ;;  %v1282_v15 = vpop.f32.mrb[26].mxu1 }
 0x392   : > { %1046 = vst.msk [vmem:[%s1451_s22 + $0x50] sm:$0xff] %vm1035_vm2, %v1013_v12  ;;  %v1016_v16 = vadd.f32 %v1282_v15, %v1157_v58  ;;  %v1007_v17 = vpop.f32.mrb[27].mxu1 }
 0x393   : > { %1044 = vst.msk [vmem:[%s1451_s22 + $0x40] sm:$0xff] %vm1035_vm2, %v1005_v14  ;;  %v1008_v18 = vadd.f32 %v1157_v58, %v1007_v17 }
 0x394   : > { %1047 = vst.msk [vmem:[%s1451_s22 + $0x58] sm:$0xff] %vm1035_vm2, %v1016_v16 }
 0x395   : > { %1045 = vst.msk [vmem:[%s1451_s22 + $0x48] sm:$0xff] %vm1035_vm2, %v1008_v18 }
 0x397   : > { %v1285_v19 = vpop.f32.mrb[28].mxu1 }
 0x398   : > { %v1029_v20 = vadd.f32 %v1285_v19, %v1157_v58  ;;  %v1020_v21 = vpop.f32.mrb[29].mxu1 }
 0x399   : > { %v1021_v22 = vadd.f32 %v1157_v58, %v1020_v21  ;;  %v1286_v23 = vpop.f32.mrb[30].mxu1 }
 0x39a   : > { %1050 = vst.msk [vmem:[%s1451_s22 + $0x70] sm:$0xff] %vm1035_vm2, %v1029_v20  ;;  %v1032_v24 = vadd.f32 %v1286_v23, %v1157_v58  ;;  %v1023_v25 = vpop.f32.mrb[31].mxu1 }
 0x39b   : > { %1048 = vst.msk [vmem:[%s1451_s22 + $0x60] sm:$0xff] %vm1035_vm2, %v1021_v22  ;;  %v1024_v26 = vadd.f32 %v1157_v58, %v1023_v25 }
 0x39c   : > { %1051 = vst.msk [vmem:[%s1451_s22 + $0x78] sm:$0xff] %vm1035_vm2, %v1032_v24 }
 0x39d   : > { %1049 = vst.msk [vmem:[%s1451_s22 + $0x68] sm:$0xff] %vm1035_vm2, %v1024_v26 }
 0x39e PF: > { %s19_s30 = sadd.s32 1, %s1316_s30  }
 0x39f   : > { %p16_p4 = scmp.ge.s32.totalorder %s19_s30, 5  }
 0x3a1   :  { %18 = sbr.rel (!%p16_p4) target bundleno = 1 (0x1), region = 86 }

// kernel: tpu_custom_call.1
= control target key start
LH: loop header
LB: loop body
LE: loop exit
PB: predicated region body
PF: predicated region fallthrough
CT: control target
= control target key end

     0   :  { %s1368_s30 = smov 0   ;;  %s1488_s0 = inlined_call_operand.vmem [shape: bf16[384,16], index: 0, kind: input, shape index: {}]   ;;  %s1489_s1 = inlined_call_operand.vmem [shape: bf16[16,32], index: 1, kind: input, shape index: {}]   ;;  %s1490_s2 = inlined_call_operand.vmem [shape: f32[1,32], index: 2, kind: input, shape index: {}]   ;;  %s1491_s3 = inlined_call_operand.vmem [shape: bf16[32,32], index: 3, kind: input, shape index: {}]   ;;  %s1492_s4 = inlined_call_operand.vmem [shape: f32[1,32], index: 4, kind: input, shape index: {}]   ;;  %s1493_s5 = inlined_call_operand.vmem [shape: bf16[32,32], index: 5, kind: input, shape index: {}]   ;;  %s1494_s6 = inlined_call_operand.vmem [shape: f32[1,32], index: 6, kind: input, shape index: {}]   ;;  %s1495_s7 = inlined_call_operand.vmem [shape: bf16[32,4], index: 7, kind: input, shape index: {}]   ;;  %s1496_s8 = inlined_call_operand.vmem [shape: f32[1,4], index: 8, kind: input, shape index: {}]   ;;  %s1497_s9 = inlined_call_operand.vmem [shape: f32[384,4], index: 9, kind: output, shape index: {}]  }
   0x1 LB: > { %s1108_s10 = sadd.s32 4294967295, %s1316_s30   ;;  %p1112_p0 = scmp.ge.s32.totalorder %s1316_s30, 1  ;;  %s1316_s30 = sphi %s1368_s30, %s19_s30  }
   0x2   : > { %p288_p1 = scmp.lt.s32.totalorder %s1316_s30, 4 }
   0x4   : > { %p289_p2 = pnand %p1112_p0, %p288_p1 }
   0x5   : > { %v1295_v0 = vld [vmem:[%s1489_s1] sm:$0xff] (!%p289_p2)   ;;  %s1113_s13 = sshll.u32 (!%p289_p2), %s1108_s10, 4  ;;  %vm408_vm0 = vcmask (!%p289_p2), 130048   ;;  %v1305_v10 = vld [vmem:[%s1491_s3 + $0x8] sm:$0xff] (!%p289_p2)   ;;  %vm577_vm1 = vcmask (!%p289_p2), 261120   ;;  %vm1035_vm2 = vcmask (!%p289_p2), 31744  }
   0x6   : > { %292 = sbr.rel (%p289_p2) target bundleno = 926 (0x39e), region = 56  ;;  %p325_p3 = scmp.lt.s32.totalorder (!%p289_p2), %s1113_s13, 47  ;;  %1209 = vmatprep.subr.bf16.mxu0 (!%p289_p2), %v1295_v0  ;;  %v1304_v9 = vld [vmem:[%s1491_s3] sm:$0xff] (!%p289_p2)   ;;  %v1307_v12 = vld [vmem:[%s1493_s5 + $0x8] sm:$0xff] (!%p289_p2)  }
   0x7   : > { %1210 = vmatpush3.bf16.msra.mxu0 (!%p289_p2), %v1295_v0  ;;  %1227 = vmatprep.subr.bf16.mxu1 (!%p289_p2), %v1304_v9  ;;  %v1306_v11 = vld [vmem:[%s1493_s5] sm:$0xff] (!%p289_p2)  }
   0x8   : > { %1228 = vmatpush3.bf16.msra.mxu1 (!%p289_p2), %v1304_v9  ;;  %1247 = vmatprep.subr.bf16.mxu0 (!%p289_p2), %v1306_v11  ;;  %v1117_v13 = vld [vmem:[%s1490_s2] ss:$0 sm:$0xff] (!%p289_p2) }
   0x9   : > { %1229 = vmatprep.subr.bf16.mxu1 (!%p289_p2), %v1305_v10 }
   0xc   : > { %1230 = vmatpush3.bf16.msra.mxu1 (!%p289_p2), %v1305_v10 }
   0xd   : > { %s1499_s13 = smov (!%p325_p3, %s1113_s13), 47 }
   0xe   : > { %s1114_s14 = sshll.u32 %s1499_s13, 2 }
   0xf   : > { %s328_s17 = scalar_lea.vmem %s1488_s0, %s1114_s14 }
  0x10   : > { %v1296_v1 = vld [vmem:[%s328_s17] sm:$0xff]   ;;  %v1297_v2 = vld [vmem:[%s328_s17 + $0x8] sm:$0xff]   ;;  %v1298_v3 = vld [vmem:[%s328_s17 + $0x10] sm:$0xff]  }
  0x11   : > { %1211 = vmatprep.mubr.msk.bf16.mxu0 %vm408_vm0, %v1296_v1  ;;  %v1299_v4 = vld [vmem:[%s328_s17 + $0x18] sm:$0xff]   ;;  %v1300_v5 = vld [vmem:[%s328_s17 + $0x20] sm:$0xff]   ;;  %v1301_v6 = vld [vmem:[%s328_s17 + $0x28] sm:$0xff]  }
  0x12   : > { %1212 = vmatmul.mubr.msk.bf16.vlgmr.msra.gmra.mrb[0].mxu0 %vm408_vm0, %v1297_v2  ;;  %v1302_v7 = vld [vmem:[%s328_s17 + $0x30] sm:$0xff]   ;;  %v1303_v8 = vld [vmem:[%s328_s17 + $0x38] sm:$0xff]   ;;  %s1116_s17 = sshll.u32 %s1499_s13, 3 }
  0x13   : > { %1215 = vmatprep.mubr.msk.bf16.mxu0 %vm408_vm0, %v1298_v3  ;;  %1248 = vmatpush3.bf16.msra.mxu0 %v1306_v11  ;;  %s1451_s22 = scalar_lea.vmem %s1497_s9, %s1116_s17 }
  0x14   : > { %1249 = vmatprep.subr.bf16.mxu0 %v1307_v12 }
  0x17   : > { %1250 = vmatpush3.bf16.msra.mxu0 %v1307_v12 }
  0x1a   : > { %1216 = vmatmul.mubr.msk.bf16.gmra.mrb[4].mxu0 %vm408_vm0, %v1299_v4 }
  0x1b   : > { %1219 = vmatprep.mubr.msk.bf16.mxu0 %vm408_vm0, %v1300_v5 }
  0x22   : > { %1220 = vmatmul.mubr.msk.bf16.gmra.mrb[8].mxu0 %vm408_vm0, %v1301_v6  ;;  %v1308_v6 = vld [vmem:[%s1495_s7] sm:$0xff]  }
  0x23   : > { %1223 = vmatprep.mubr.msk.bf16.mxu0 %vm408_vm0, %v1302_v7  ;;  %v1309_v7 = vld [vmem:[%s1495_s7 + $0x8] sm:$0xff]   ;;  %1267 = vmatprep.subr.bf16.mxu1 %v1308_v6 }
  0x2a   : > { %1224 = vmatmul.mubr.msk.bf16.gmra.mrb[12].mxu0 %vm408_vm0, %v1303_v8  ;;  %v1135_v8 = vld [vmem:[%s1492_s4] ss:$0 sm:$0xff] }
  0xe5   : > { %v1213_v14 = vpop.f32.mrb[0].mxu0 }
  0xe6   : > { %v476_v15 = vadd.f32 %v1213_v14, %v1117_v13  ;;  %v467_v16 = vpop.f32.mrb[1].mxu0 }
  0xe7   : > { %v468_v17 = vadd.f32 %v1117_v13, %v467_v16  ;;  %v1214_v18 = vpop.f32.mrb[2].mxu0 }
  0xe8   : > { %v479_v19 = vadd.f32 %v1214_v18, %v1117_v13  ;;  %v470_v20 = vpop.f32.mrb[3].mxu0  ;;  %v532_v22 = vmax.f32 %v476_v15, 0.0 }
  0xe9   : > { %v471_v21 = vadd.f32 %v1117_v13, %v470_v20  ;;  %v530_v24 = vmax.f32 %v468_v17, 0.0 }
  0xea   : > { %v533_v23 = vmax.f32 %v479_v19, 0.0 }
  0xeb   : > { %v531_v25 = vmax.f32 %v471_v21, 0.0 }
  0xec   : > { %v547_v26 = vpack.c.bf16 %v533_v23, %v532_v22 }
  0xed   : > { %v1217_v27 = vpop.f32.mrb[4].mxu0  ;;  %v546_v28 = vpack.c.bf16 %v531_v25, %v530_v24 }
  0xee   : > { %v492_v29 = vadd.f32 %v1217_v27, %v1117_v13  ;;  %v483_v30 = vpop.f32.mrb[5].mxu0 }
  0xef   : > { %v484_v31 = vadd.f32 %v1117_v13, %v483_v30  ;;  %v1218_v32 = vpop.f32.mrb[6].mxu0  ;;  %1231 = vmatprep.mubr.msk.bf16.mxu1 %vm577_vm1, %v546_v28 }
  0xf0   : > { %v495_v33 = vadd.f32 %v1218_v32, %v1117_v13  ;;  %v486_v34 = vpop.f32.mrb[7].mxu0  ;;  %1232 = vmatmul.mubr.msk.bf16.vlgmr.msra.gmra.mrb[0].mxu1 %vm577_vm1, %v547_v26  ;;  %v536_v36 = vmax.f32 %v492_v29, 0.0 }
  0xf1   : > { %v487_v35 = vadd.f32 %v1117_v13, %v486_v34  ;;  %v534_v38 = vmax.f32 %v484_v31, 0.0  ;;  %1268 = vmatpush3.bf16.msra.mxu1 %v1308_v6 }
  0xf2   : > { %v537_v37 = vmax.f32 %v495_v33, 0.0  ;;  %1269 = vmatprep.subr.bf16.mxu1 %v1309_v7 }
  0xf3   : > { %v535_v39 = vmax.f32 %v487_v35, 0.0 }
  0xf4   : > { %v549_v40 = vpack.c.bf16 %v537_v37, %v536_v36 }
  0xf5   : > { %v548_v41 = vpack.c.bf16 %v535_v39, %v534_v38  ;;  %v1221_v42 = vpop.f32.mrb[8].mxu0  ;;  %1270 = vmatpush3.bf16.msra.mxu1 %v1309_v7 }
  0xf6   : > { %v508_v43 = vadd.f32 %v1221_v42, %v1117_v13  ;;  %v499_v44 = vpop.f32.mrb[9].mxu0 }
  0xf7   : > { %v500_v45 = vadd.f32 %v1117_v13, %v499_v44  ;;  %v1222_v46 = vpop.f32.mrb[10].mxu0  ;;  %1235 = vmatprep.mubr.msk.bf16.mxu1 %vm577_vm1, %v548_v41 }
  0xf8   : > { %v511_v47 = vadd.f32 %v1222_v46, %v1117_v13  ;;  %v502_v48 = vpop.f32.mrb[11].mxu0  ;;  %1236 = vmatmul.mubr.msk.bf16.gmra.mrb[4].mxu1 %vm577_vm1, %v549_v40  ;;  %v540_v50 = vmax.f32 %v508_v43, 0.0 }
  0xf9   : > { %v503_v49 = vadd.f32 %v1117_v13, %v502_v48  ;;  %v538_v52 = vmax.f32 %v500_v45, 0.0 }
  0xfa   : > { %v541_v51 = vmax.f32 %v511_v47, 0.0 }
  0xfb   : > { %v539_v53 = vmax.f32 %v503_v49, 0.0 }
  0xfc   : > { %v551_v54 = vpack.c.bf16 %v541_v51, %v540_v50 }
  0xfd   : > { %v550_v55 = vpack.c.bf16 %v539_v53, %v538_v52  ;;  %v1225_v56 = vpop.f32.mrb[12].mxu0 }
  0xfe   : > { %v524_v57 = vadd.f32 %v1225_v56, %v1117_v13  ;;  %v515_v58 = vpop.f32.mrb[13].mxu0 }
  0xff   : > { %v516_v59 = vadd.f32 %v1117_v13, %v515_v58  ;;  %v1226_v60 = vpop.f32.mrb[14].mxu0  ;;  %1239 = vmatprep.mubr.msk.bf16.mxu1 %vm577_vm1, %v550_v55 }
 0x100   : > { %v527_v61 = vadd.f32 %v1226_v60, %v1117_v13  ;;  %v518_v62 = vpop.f32.mrb[15].mxu0  ;;  %1240 = vmatmul.mubr.msk.bf16.gmra.mrb[8].mxu1 %vm577_vm1, %v551_v54  ;;  %v544_v0 = vmax.f32 %v524_v57, 0.0 }
 0x101   : > { %v519_v63 = vadd.f32 %v1117_v13, %v518_v62  ;;  %v542_v2 = vmax.f32 %v516_v59, 0.0 }
 0x102   : > { %v545_v1 = vmax.f32 %v527_v61, 0.0 }
 0x103   : > { %v543_v3 = vmax.f32 %v519_v63, 0.0 }
 0x104   : > { %v553_v4 = vpack.c.bf16 %v545_v1, %v544_v0  ;;  %v1146_v1 = vld [vmem:[%s1494_s6] ss:$0 sm:$0xff] }
 0x105   : > { %v552_v5 = vpack.c.bf16 %v543_v3, %v542_v2 }
 0x107   : > { %1243 = vmatprep.mubr.msk.bf16.mxu1 %vm577_vm1, %v552_v5 }
 0x108   : > { %1244 = vmatmul.mubr.msk.bf16.gmra.mrb[12].mxu1 %vm577_vm1, %v553_v4 }
 0x1c3   : > { %v1233_v9 = vpop.f32.mrb[0].mxu1 }
 0x1c4   : > { %v645_v10 = vadd.f32 %v1233_v9, %v1135_v8  ;;  %v636_v11 = vpop.f32.mrb[1].mxu1 }
 0x1c5   : > { %v637_v12 = vadd.f32 %v1135_v8, %v636_v11  ;;  %v1234_v13 = vpop.f32.mrb[2].mxu1 }
 0x1c6   : > { %v648_v14 = vadd.f32 %v1234_v13, %v1135_v8  ;;  %v639_v15 = vpop.f32.mrb[3].mxu1  ;;  %v701_v17 = vmax.f32 %v645_v10, 0.0 }
 0x1c7   : > { %v640_v16 = vadd.f32 %v1135_v8, %v639_v15  ;;  %v699_v19 = vmax.f32 %v637_v12, 0.0 }
 0x1c8   : > { %v702_v18 = vmax.f32 %v648_v14, 0.0 }
 0x1c9   : > { %v700_v20 = vmax.f32 %v640_v16, 0.0 }
 0x1ca   : > { %v716_v21 = vpack.c.bf16 %v702_v18, %v701_v17 }
 0x1cb   : > { %v715_v22 = vpack.c.bf16 %v700_v20, %v699_v19  ;;  %v1237_v23 = vpop.f32.mrb[4].mxu1 }
 0x1cc   : > { %v661_v24 = vadd.f32 %v1237_v23, %v1135_v8  ;;  %v652_v25 = vpop.f32.mrb[5].mxu1 }
 0x1cd   : > { %v653_v26 = vadd.f32 %v1135_v8, %v652_v25  ;;  %v1238_v27 = vpop.f32.mrb[6].mxu1  ;;  %1251 = vmatprep.mubr.msk.bf16.mxu0 %vm577_vm1, %v715_v22 }
 0x1ce   : > { %v664_v28 = vadd.f32 %v1238_v27, %v1135_v8  ;;  %v655_v29 = vpop.f32.mrb[7].mxu1  ;;  %1252 = vmatmul.mubr.msk.bf16.vlgmr.msra.gmra.mrb[16].mxu0 %vm577_vm1, %v716_v21  ;;  %v705_v31 = vmax.f32 %v661_v24, 0.0 }
 0x1cf   : > { %v656_v30 = vadd.f32 %v1135_v8, %v655_v29  ;;  %v703_v33 = vmax.f32 %v653_v26, 0.0 }
 0x1d0   : > { %v706_v32 = vmax.f32 %v664_v28, 0.0 }
 0x1d1   : > { %v704_v34 = vmax.f32 %v656_v30, 0.0 }
 0x1d2   : > { %v718_v35 = vpack.c.bf16 %v706_v32, %v705_v31 }
 0x1d3   : > { %v717_v36 = vpack.c.bf16 %v704_v34, %v703_v33  ;;  %v1241_v37 = vpop.f32.mrb[8].mxu1 }
 0x1d4   : > { %v677_v38 = vadd.f32 %v1241_v37, %v1135_v8  ;;  %v668_v39 = vpop.f32.mrb[9].mxu1 }
 0x1d5   : > { %v669_v40 = vadd.f32 %v1135_v8, %v668_v39  ;;  %v1242_v41 = vpop.f32.mrb[10].mxu1  ;;  %1255 = vmatprep.mubr.msk.bf16.mxu0 %vm577_vm1, %v717_v36 }
 0x1d6   : > { %v680_v42 = vadd.f32 %v1242_v41, %v1135_v8  ;;  %v671_v43 = vpop.f32.mrb[11].mxu1  ;;  %1256 = vmatmul.mubr.msk.bf16.gmra.mrb[20].mxu0 %vm577_vm1, %v718_v35  ;;  %v709_v45 = vmax.f32 %v677_v38, 0.0 }
 0x1d7   : > { %v672_v44 = vadd.f32 %v1135_v8, %v671_v43  ;;  %v707_v47 = vmax.f32 %v669_v40, 0.0 }
 0x1d8   : > { %v710_v46 = vmax.f32 %v680_v42, 0.0 }
 0x1d9   : > { %v708_v48 = vmax.f32 %v672_v44, 0.0 }
 0x1da   : > { %v720_v49 = vpack.c.bf16 %v710_v46, %v709_v45 }
 0x1db   : > { %v719_v50 = vpack.c.bf16 %v708_v48, %v707_v47  ;;  %v1245_v51 = vpop.f32.mrb[12].mxu1 }
 0x1dc   : > { %v693_v52 = vadd.f32 %v1245_v51, %v1135_v8  ;;  %v684_v53 = vpop.f32.mrb[13].mxu1 }
 0x1dd   : > { %v685_v54 = vadd.f32 %v1135_v8, %v684_v53  ;;  %v1246_v55 = vpop.f32.mrb[14].mxu1  ;;  %1259 = vmatprep.mubr.msk.bf16.mxu0 %vm577_vm1, %v719_v50 }
 0x1de   : > { %v696_v56 = vadd.f32 %v1246_v55, %v1135_v8  ;;  %v687_v57 = vpop.f32.mrb[15].mxu1  ;;  %1260 = vmatmul.mubr.msk.bf16.gmra.mrb[24].mxu0 %vm577_vm1, %v720_v49  ;;  %v713_v59 = vmax.f32 %v693_v52, 0.0 }
 0x1df   : > { %v688_v58 = vadd.f32 %v1135_v8, %v687_v57  ;;  %v711_v61 = vmax.f32 %v685_v54, 0.0 }
 0x1e0   : > { %v714_v60 = vmax.f32 %v696_v56, 0.0 }
 0x1e1   : > { %v712_v62 = vmax.f32 %v688_v58, 0.0  ;;  %v1157_v58 = vld [vmem:[%s1496_s8] ss:$0 sm:$0xff] }
 0x1e2   : > { %v722_v63 = vpack.c.bf16 %v714_v60, %v713_v59 }
 0x1e3   : > { %v721_v0 = vpack.c.bf16 %v712_v62, %v711_v61 }
 0x1e5   : > { %1263 = vmatprep.mubr.msk.bf16.mxu0 %vm577_vm1, %v721_v0 }
 0x1e6   : > { %1264 = vmatmul.mubr.msk.bf16.gmra.mrb[28].mxu0 %vm577_vm1, %v722_v63 }
 0x2a1   : > { %v1253_v2 = vpop.f32.mrb[16].mxu0 }
 0x2a2   : > { %v813_v3 = vadd.f32 %v1253_v2, %v1146_v1  ;;  %v804_v4 = vpop.f32.mrb[17].mxu0 }
 0x2a3   : > { %v805_v5 = vadd.f32 %v1146_v1, %v804_v4  ;;  %v1254_v6 = vpop.f32.mrb[18].mxu0 }
 0x2a4   : > { %v816_v7 = vadd.f32 %v1254_v6, %v1146_v1  ;;  %v807_v8 = vpop.f32.mrb[19].mxu0  ;;  %v869_v10 = vmax.f32 %v813_v3, 0.0 }
 0x2a5   : > { %v808_v9 = vadd.f32 %v1146_v1, %v807_v8  ;;  %v867_v12 = vmax.f32 %v805_v5, 0.0 }
 0x2a6   : > { %v870_v11 = vmax.f32 %v816_v7, 0.0 }
 0x2a7   : > { %v868_v13 = vmax.f32 %v808_v9, 0.0 }
 0x2a8   : > { %v884_v14 = vpack.c.bf16 %v870_v11, %v869_v10 }
 0x2a9   : > { %v883_v15 = vpack.c.bf16 %v868_v13, %v867_v12  ;;  %v1257_v16 = vpop.f32.mrb[20].mxu0 }
 0x2aa   : > { %v829_v17 = vadd.f32 %v1257_v16, %v1146_v1  ;;  %v820_v18 = vpop.f32.mrb[21].mxu0 }
 0x2ab   : > { %v821_v19 = vadd.f32 %v1146_v1, %v820_v18  ;;  %v1258_v20 = vpop.f32.mrb[22].mxu0  ;;  %1271 = vmatprep.mubr.msk.bf16.mxu1 %vm577_vm1, %v883_v15 }
 0x2ac   : > { %v832_v21 = vadd.f32 %v1258_v20, %v1146_v1  ;;  %v823_v22 = vpop.f32.mrb[23].mxu0  ;;  %1272 = vmatmul.mubr.msk.bf16.vlgmr.msra.gmra.mrb[16].mxu1 %vm577_vm1, %v884_v14  ;;  %v873_v24 = vmax.f32 %v829_v17, 0.0 }
 0x2ad   : > { %v824_v23 = vadd.f32 %v1146_v1, %v823_v22  ;;  %v871_v26 = vmax.f32 %v821_v19, 0.0 }
 0x2ae   : > { %v874_v25 = vmax.f32 %v832_v21, 0.0 }
 0x2af   : > { %v872_v27 = vmax.f32 %v824_v23, 0.0 }
 0x2b0   : > { %v886_v28 = vpack.c.bf16 %v874_v25, %v873_v24 }
 0x2b1   : > { %v885_v29 = vpack.c.bf16 %v872_v27, %v871_v26  ;;  %v1261_v30 = vpop.f32.mrb[24].mxu0 }
 0x2b2   : > { %v845_v31 = vadd.f32 %v1261_v30, %v1146_v1  ;;  %v836_v32 = vpop.f32.mrb[25].mxu0 }
 0x2b3   : > { %v837_v33 = vadd.f32 %v1146_v1, %v836_v32  ;;  %v1262_v34 = vpop.f32.mrb[26].mxu0  ;;  %1275 = vmatprep.mubr.msk.bf16.mxu1 %vm577_vm1, %v885_v29 }
 0x2b4   : > { %v848_v35 = vadd.f32 %v1262_v34, %v1146_v1  ;;  %v839_v36 = vpop.f32.mrb[27].mxu0  ;;  %1276 = vmatmul.mubr.msk.bf16.gmra.mrb[20].mxu1 %vm577_vm1, %v886_v28  ;;  %v877_v38 = vmax.f32 %v845_v31, 0.0 }
 0x2b5   : > { %v840_v37 = vadd.f32 %v1146_v1, %v839_v36  ;;  %v875_v40 = vmax.f32 %v837_v33, 0.0 }
 0x2b6   : > { %v878_v39 = vmax.f32 %v848_v35, 0.0 }
 0x2b7   : > { %v876_v41 = vmax.f32 %v840_v37, 0.0 }
 0x2b8   : > { %v888_v42 = vpack.c.bf16 %v878_v39, %v877_v38 }
 0x2b9   : > { %v887_v43 = vpack.c.bf16 %v876_v41, %v875_v40  ;;  %v1265_v44 = vpop.f32.mrb[28].mxu0 }
 0x2ba   : > { %v861_v45 = vadd.f32 %v1265_v44, %v1146_v1  ;;  %v852_v46 = vpop.f32.mrb[29].mxu0 }
 0x2bb   : > { %v853_v47 = vadd.f32 %v1146_v1, %v852_v46  ;;  %v1266_v48 = vpop.f32.mrb[30].mxu0  ;;  %1279 = vmatprep.mubr.msk.bf16.mxu1 %vm577_vm1, %v887_v43 }
 0x2bc   : > { %v864_v49 = vadd.f32 %v1266_v48, %v1146_v1  ;;  %v855_v50 = vpop.f32.mrb[31].mxu0  ;;  %1280 = vmatmul.mubr.msk.bf16.gmra.mrb[24].mxu1 %vm577_vm1, %v888_v42  ;;  %v881_v52 = vmax.f32 %v861_v45, 0.0 }
 0x2bd   : > { %v856_v51 = vadd.f32 %v1146_v1, %v855_v50  ;;  %v879_v54 = vmax.f32 %v853_v47, 0.0 }
 0x2be   : > { %v882_v53 = vmax.f32 %v864_v49, 0.0 }
 0x2bf   : > { %v880_v55 = vmax.f32 %v856_v51, 0.0 }
 0x2c0   : > { %v890_v56 = vpack.c.bf16 %v882_v53, %v881_v52 }
 0x2c1   : > { %v889_v57 = vpack.c.bf16 %v880_v55, %v879_v54 }
 0x2c3   : > { %1283 = vmatprep.mubr.msk.bf16.mxu1 %vm577_vm1, %v889_v57 }
 0x2c4   : > { %1284 = vmatmul.mubr.msk.bf16.gmra.mrb[28].mxu1 %vm577_vm1, %v890_v56 }
 0x37f   : > { %v1273_v59 = vpop.f32.mrb[16].mxu1 }
 0x380   : > { %v981_v60 = vadd.f32 %v1273_v59, %v1157_v58  ;;  %v972_v61 = vpop.f32.mrb[17].mxu1 }
 0x381   : > { %v973_v62 = vadd.f32 %v1157_v58, %v972_v61  ;;  %v1274_v63 = vpop.f32.mrb[18].mxu1 }
 0x382   : > { %1038 = vst.msk [vmem:[%s1451_s22 + $0x10] sm:$0xff] %vm1035_vm2, %v981_v60  ;;  %v984_v0 = vadd.f32 %v1274_v63, %v1157_v58  ;;  %v975_v1 = vpop.f32.mrb[19].mxu1 }
 0x383   : > { %1036 = vst.msk [vmem:[%s1451_s22] sm:$0xff] %vm1035_vm2, %v973_v62  ;;  %v976_v2 = vadd.f32 %v1157_v58, %v975_v1 }
 0x384   : > { %1039 = vst.msk [vmem:[%s1451_s22 + $0x18] sm:$0xff] %vm1035_vm2, %v984_v0 }
 0x385   : > { %1037 = vst.msk [vmem:[%s1451_s22 + $0x8] sm:$0xff] %vm1035_vm2, %v976_v2 }
 0x387   : > { %v1277_v3 = vpop.f32.mrb[20].mxu1 }
 0x388   : > { %v997_v4 = vadd.f32 %v1277_v3, %v1157_v58  ;;  %v988_v5 = vpop.f32.mrb[21].mxu1 }
 0x389   : > { %v989_v6 = vadd.f32 %v1157_v58, %v988_v5  ;;  %v1278_v7 = vpop.f32.mrb[22].mxu1 }
 0x38a   : > { %1042 = vst.msk [vmem:[%s1451_s22 + $0x30] sm:$0xff] %vm1035_vm2, %v997_v4  ;;  %v1000_v8 = vadd.f32 %v1278_v7, %v1157_v58  ;;  %v991_v9 = vpop.f32.mrb[23].mxu1 }
 0x38b   : > { %1040 = vst.msk [vmem:[%s1451_s22 + $0x20] sm:$0xff] %vm1035_vm2, %v989_v6  ;;  %v992_v10 = vadd.f32 %v1157_v58, %v991_v9 }
 0x38c   : > { %1043 = vst.msk [vmem:[%s1451_s22 + $0x38] sm:$0xff] %vm1035_vm2, %v1000_v8 }
 0x38d   : > { %1041 = vst.msk [vmem:[%s1451_s22 + $0x28] sm:$0xff] %vm1035_vm2, %v992_v10 }
 0x38f   : > { %v1281_v11 = vpop.f32.mrb[24].mxu1 }
 0x390   : > { %v1013_v12 = vadd.f32 %v1281_v11, %v1157_v58  ;;  %v1004_v13 = vpop.f32.mrb[25].mxu1 }
 0x391   : > { %v1005_v14 = vadd.f32 %v1157_v58, %v1004_v13  ;;  %v1282_v15 = vpop.f32.mrb[26].mxu1 }
 0x392   : > { %1046 = vst.msk [vmem:[%s1451_s22 + $0x50] sm:$0xff] %vm1035_vm2, %v1013_v12  ;;  %v1016_v16 = vadd.f32 %v1282_v15, %v1157_v58  ;;  %v1007_v17 = vpop.f32.mrb[27].mxu1 }
 0x393   : > { %1044 = vst.msk [vmem:[%s1451_s22 + $0x40] sm:$0xff] %vm1035_vm2, %v1005_v14  ;;  %v1008_v18 = vadd.f32 %v1157_v58, %v1007_v17 }
 0x394   : > { %1047 = vst.msk [vmem:[%s1451_s22 + $0x58] sm:$0xff] %vm1035_vm2, %v1016_v16 }
 0x395   : > { %1045 = vst.msk [vmem:[%s1451_s22 + $0x48] sm:$0xff] %vm1035_vm2, %v1008_v18 }
 0x397   : > { %v1285_v19 = vpop.f32.mrb[28].mxu1 }
 0x398   : > { %v1029_v20 = vadd.f32 %v1285_v19, %v1157_v58  ;;  %v1020_v21 = vpop.f32.mrb[29].mxu1 }
 0x399   : > { %v1021_v22 = vadd.f32 %v1157_v58, %v1020_v21  ;;  %v1286_v23 = vpop.f32.mrb[30].mxu1 }
 0x39a   : > { %1050 = vst.msk [vmem:[%s1451_s22 + $0x70] sm:$0xff] %vm1035_vm2, %v1029_v20  ;;  %v1032_v24 = vadd.f32 %v1286_v23, %v1157_v58  ;;  %v1023_v25 = vpop.f32.mrb[31].mxu1 }
 0x39b   : > { %1048 = vst.msk [vmem:[%s1451_s22 + $0x60] sm:$0xff] %vm1035_vm2, %v1021_v22  ;;  %v1024_v26 = vadd.f32 %v1157_v58, %v1023_v25 }
 0x39c   : > { %1051 = vst.msk [vmem:[%s1451_s22 + $0x78] sm:$0xff] %vm1035_vm2, %v1032_v24 }
 0x39d   : > { %1049 = vst.msk [vmem:[%s1451_s22 + $0x68] sm:$0xff] %vm1035_vm2, %v1024_v26 }
 0x39e PF: > { %s19_s30 = sadd.s32 1, %s1316_s30  }
 0x39f   : > { %p16_p4 = scmp.ge.s32.totalorder %s19_s30, 5  }
 0x3a1   :  { %18 = sbr.rel (!%p16_p4) target bundleno = 1 (0x1), region = 86 }

</bundles_post_ra>
